<compile_context>
chip_gen: v6e
topology: v6e:2x2x1
jax: 0.10.0
libtpu: 0.0.40
codegen_flags: <defaults>
</compile_context>

<pallas_src>
import jax
import jax.numpy as jnp
from jax.experimental import pallas as pl
from jax.experimental.pallas import tpu as pltpu


PARAM_ORDER = ["WvhT", "bvh", "WwhT", "bwh", "Wv", "bv",
               "WihT", "bih", "WhhT", "bhh", "ln_g", "ln_b"]


def bidir_pointer_kernel(
    hr_ref, mask_ref, h0_ref,
    WvhT_ref, bvh_ref, WwhT_ref, bwh_ref, Wv_ref, bv_ref,
    WihT_ref, bih_ref, WhhT_ref, bhh_ref, ln_g_ref, ln_b_ref,
    out_ref,
):
    f32 = jnp.float32
    B, S, I = hr_ref.shape
    H = h0_ref.shape[1]

    hr = hr_ref[...].astype(f32)          # (B, S, 2H)
    mask = mask_ref[...]                  # (B, S) int32
    h = h0_ref[...].astype(f32)           # (B, H)

    # vh = Linear(2H -> H)(hr): single (B*S, 2H) @ (2H, H) matmul, loop-invariant.
    vh = (jnp.dot(hr.reshape(B * S, I), WvhT_ref[...],
                  preferred_element_type=f32)
          + bvh_ref[...]).reshape(B, S, H)

    neg_big = jnp.float32(-1e30)          # finite "-inf": avoids NaN on all-masked rows
    v_row = Wv_ref[...]                   # (1, H)   -- hoisted tiny reads
    v_bias = bv_ref[...]                  # (1, 1)

    for t in range(2):                    # two pointer steps (start / end)
        wh = jnp.dot(h, WwhT_ref[...], preferred_element_type=f32) + bwh_ref[...]  # (B, H)
        fk = jnp.tanh(vh + wh[:, None, :])                                          # (B, S, H)

        # v(fk): elementwise against the (1, H) row of `v`, lane-reduce -> (B, S)
        vf = jnp.sum(fk * v_row, axis=-1) + v_bias                                  # (B, S)
        vf = jnp.where(mask == 0, neg_big, vf)

        # softmax over the sequence axis (lanes), EUP reciprocal
        m = jnp.max(vf, axis=1, keepdims=True)
        e = jnp.exp(vf - m)
        denom = jnp.sum(e, axis=1, keepdims=True)
        beta = e * pl.reciprocal(denom, approx=True)                                # (B, S)

        out_ref[t] = beta                 # whole (B, S) slab store

        # h_beta[b] = beta[b] @ hr[b]  (attention pooling); B is static & tiny, so a
        # couple of small 2-D MXU dots instead of a batched dot_general.
        h_beta = jnp.concatenate(
            [jnp.dot(beta[b:b + 1, :], hr[b], preferred_element_type=f32)
             for b in range(B)],
            axis=0)                       # (B, 2H)

        # LayerNorm over the 2H features (is_bn=True, nn.LayerNorm default eps=1e-5)
        mu = jnp.mean(h_beta, axis=1, keepdims=True)
        var = jnp.mean((h_beta - mu) ** 2, axis=1, keepdims=True)
        h_beta = (h_beta - mu) * jax.lax.rsqrt(var + 1e-5) * ln_g_ref[...] + ln_b_ref[...]

        # GRUCell with fused gate matmuls (gate order r, z, n = torch.nn.GRUCell)
        gi = jnp.dot(h_beta, WihT_ref[...], preferred_element_type=f32) + bih_ref[...]  # (B, 3H)
        gh = jnp.dot(h, WhhT_ref[...], preferred_element_type=f32) + bhh_ref[...]       # (B, 3H)
        r = jax.nn.sigmoid(gi[:, 0:H] + gh[:, 0:H])
        z = jax.nn.sigmoid(gi[:, H:2 * H] + gh[:, H:2 * H])
        n = jnp.tanh(gi[:, 2 * H:3 * H] + r * gh[:, 2 * H:3 * H])
        h = (1.0 - z) * n + z * h


def init_uni_params(key, H):
    """Deterministic synthetic init (biases zero, like reset_parameters)."""
    I = 2 * H
    ks = jax.random.split(key, 5)

    def u(k, shape, scale):
        return jax.random.uniform(k, shape, jnp.float32, -1.0, 1.0) * scale

    # TODO(synk): weight_hh orthogonal init approximated with scaled uniform
    # (init only; forward math is unaffected).
    return dict(
        Wvh=u(ks[0], (H, I), 1.0 / jnp.sqrt(I)), bvh=jnp.zeros((H,), jnp.float32),
        Wwh=u(ks[1], (H, H), 1.0 / jnp.sqrt(H)), bwh=jnp.zeros((H,), jnp.float32),
        Wv=u(ks[2], (1, H), 1.0 / jnp.sqrt(H)), bv=jnp.zeros((1,), jnp.float32),
        W_ih=u(ks[3], (3 * H, I), jnp.sqrt(6.0 / (3 * H + I))),
        W_hh=u(ks[4], (3 * H, H), 1.0 / jnp.sqrt(H)),
        b_ih=jnp.zeros((3 * H,), jnp.float32),
        b_hh=jnp.zeros((3 * H,), jnp.float32),
        ln_gamma=jnp.ones((I,), jnp.float32),
        ln_beta=jnp.zeros((I,), jnp.float32),
    )


def _prep_dir_params(p, H):
    """Pre-transpose / reshape one direction's params to kernel-native layouts."""
    I = 2 * H
    return dict(
        WvhT=p["Wvh"].T,                         # (2H, H)
        bvh=p["bvh"].reshape(1, H),
        WwhT=p["Wwh"].T,                         # (H, H)
        bwh=p["bwh"].reshape(1, H),
        Wv=p["Wv"].reshape(1, H),                # row of nn.Linear(H, 1)
        bv=p["bv"].reshape(1, 1),
        WihT=p["W_ih"].T,                        # (2H, 3H) concatenated gates
        bih=p["b_ih"].reshape(1, 3 * H),
        WhhT=p["W_hh"].T,                        # (H, 3H) concatenated gates
        bhh=p["b_hh"].reshape(1, 3 * H),
        ln_g=p["ln_gamma"].reshape(1, I),
        ln_b=p["ln_beta"].reshape(1, I),
    )


@jax.jit
def boundary_pointer(hr, content_mask, h_0, params_right, params_left):
    """hr: (S, B, 2H), content_mask: (B, S) -> (2, B, S). Matches BoundaryPointer."""
    S, B, I = hr.shape
    H = I // 2
    if h_0 is None:
        h_0 = jnp.zeros((B, H), jnp.float32)
    # TODO(synk): nn.Dropout treated as identity (eval mode).
    hr_bsd = jnp.transpose(hr, (1, 0, 2))        # (B, S, 2H): feature stays on lanes
    mask_i = content_mask.astype(jnp.int32)      # (B, S): no transpose needed

    prep_r = _prep_dir_params(params_right, H)
    prep_l = _prep_dir_params(params_left, H)
    stacked = [jnp.stack([prep_r[k], prep_l[k]], axis=0) for k in PARAM_ORDER]

    def shared_spec(a):
        return pl.BlockSpec(a.shape, lambda d, nd=a.ndim: (0,) * nd)

    def per_dir_spec(a):
        return pl.BlockSpec((None,) + a.shape[1:],
                            lambda d, nd=a.ndim: (d,) + (0,) * (nd - 1))

    shared = [hr_bsd, mask_i, h_0.astype(jnp.float32)]
    out = pl.pallas_call(
        bidir_pointer_kernel,
        out_shape=jax.ShapeDtypeStruct((2, 2, B, S), jnp.float32),
        grid=(2,),                               # direction axis: right=0, left=1
        in_specs=[shared_spec(a) for a in shared] + [per_dir_spec(a) for a in stacked],
        out_specs=pl.BlockSpec((None, 2, B, S), lambda d: (d, 0, 0, 0)),
        compiler_params=pltpu.CompilerParams(dimension_semantics=("parallel",)),
    )(*shared, *stacked)                         # (2_dir, 2_steps, B, S)

    right = out[0]                               # (2, B, S)
    left = out[1][::-1]                          # left_range[[1, 0], :]
    result = (right + left) * 0.5
    # NOTE: matches the PyTorch module literally: (mask - 1) * -1e-30
    # (effectively a no-op bias; kept for forward-pass fidelity).
    new_mask = (content_mask.astype(jnp.float32) - 1.0) * -1e-30
    return result + new_mask[None]               # (2, B, S)


if __name__ == "__main__":
    H = 32          # hidden_size
    I = 2 * H       # input_size = hidden_size * 2
    S = 8           # p_seq_len
    B = 2           # batch_size

    key = jax.random.PRNGKey(0)
    k_hr, k_r, k_l = jax.random.split(key, 3)
    hr = jax.random.normal(k_hr, (S, B, I), jnp.float32)                          # (S, B, 2H)
    lengths = jnp.array([S, 5], dtype=jnp.int32)
    content_mask = (jnp.arange(S)[None, :] < lengths[:, None]).astype(jnp.int32)  # (B, S)

    params_right = init_uni_params(k_r, H)
    params_left = init_uni_params(k_l, H)

    out = boundary_pointer(hr, content_mask, None, params_right, params_left)
    out = jax.block_until_ready(out)

    # Sanity: shape/dtype, finiteness, and each averaged softmax row sums to ~1.
    assert out.shape == (2, B, S) and out.dtype == jnp.float32
    assert bool(jnp.all(jnp.isfinite(out)))
    row_sums = jnp.sum(out, axis=-1)             # (2, B)
    assert bool(jnp.all(jnp.abs(row_sums - 1.0) < 1e-2))
    print("KERNEL_OK")
</pallas_src>

<mosaic_0001>
module attributes {stable_mosaic.version = 11 : i64} {
  func.func @bidir_pointer_kernel(%arg0: i32, %arg1: memref<2x8x64xf32, #tpu.memory_space<vmem>>, %arg2: memref<2x8xi32, #tpu.memory_space<vmem>>, %arg3: memref<2x32xf32, #tpu.memory_space<vmem>>, %arg4: memref<1x64x32xf32, #tpu.memory_space<vmem>>, %arg5: memref<1x1x32xf32, #tpu.memory_space<vmem>>, %arg6: memref<1x32x32xf32, #tpu.memory_space<vmem>>, %arg7: memref<1x1x32xf32, #tpu.memory_space<vmem>>, %arg8: memref<1x1x32xf32, #tpu.memory_space<vmem>>, %arg9: memref<1x1x1xf32, #tpu.memory_space<vmem>>, %arg10: memref<1x64x96xf32, #tpu.memory_space<vmem>>, %arg11: memref<1x1x96xf32, #tpu.memory_space<vmem>>, %arg12: memref<1x32x96xf32, #tpu.memory_space<vmem>>, %arg13: memref<1x1x96xf32, #tpu.memory_space<vmem>>, %arg14: memref<1x1x64xf32, #tpu.memory_space<vmem>>, %arg15: memref<1x1x64xf32, #tpu.memory_space<vmem>>, %arg16: memref<1x2x2x8xf32, #tpu.memory_space<vmem>>) attributes {dimension_semantics = [#tpu.dimension_semantics<parallel>], iteration_bounds = array<i64: 2>, scalar_prefetch = 0 : i64, scratch_operands = 0 : i64, tpu.core_type = #tpu.core_type<tc>, window_params = [{pipeline_mode = #tpu.pipeline_mode<synchronous>, transform_indices = @transform_0, window_bounds = array<i64: 2, 8, 64>}, {pipeline_mode = #tpu.pipeline_mode<synchronous>, transform_indices = @transform_1, window_bounds = array<i64: 2, 8>}, {pipeline_mode = #tpu.pipeline_mode<synchronous>, transform_indices = @transform_2, window_bounds = array<i64: 2, 32>}, {transform_indices = @transform_3, window_bounds = array<i64: 1, 64, 32>}, {transform_indices = @transform_4, window_bounds = array<i64: 1, 1, 32>}, {transform_indices = @transform_5, window_bounds = array<i64: 1, 32, 32>}, {transform_indices = @transform_6, window_bounds = array<i64: 1, 1, 32>}, {transform_indices = @transform_7, window_bounds = array<i64: 1, 1, 32>}, {transform_indices = @transform_8, window_bounds = array<i64: 1, 1, 1>}, {transform_indices = @transform_9, window_bounds = array<i64: 1, 64, 96>}, {transform_indices = @transform_10, window_bounds = array<i64: 1, 1, 96>}, {transform_indices = @transform_11, window_bounds = array<i64: 1, 32, 96>}, {transform_indices = @transform_12, window_bounds = array<i64: 1, 1, 96>}, {transform_indices = @transform_13, window_bounds = array<i64: 1, 1, 64>}, {transform_indices = @transform_14, window_bounds = array<i64: 1, 1, 64>}, {transform_indices = @transform_15, window_bounds = array<i64: 1, 2, 2, 8>}]} {
    %c0 = arith.constant 0 : index
    %c0_0 = arith.constant 0 : index
    %c0_1 = arith.constant 0 : index
    %0 = vector.load %arg1[%c0, %c0_0, %c0_1] : memref<2x8x64xf32, #tpu.memory_space<vmem>>, vector<2x8x64xf32>
    %c0_2 = arith.constant 0 : index
    %c0_3 = arith.constant 0 : index
    %1 = vector.load %arg2[%c0_2, %c0_3] : memref<2x8xi32, #tpu.memory_space<vmem>>, vector<2x8xi32>
    %c0_4 = arith.constant 0 : index
    %c0_5 = arith.constant 0 : index
    %2 = vector.load %arg3[%c0_4, %c0_5] : memref<2x32xf32, #tpu.memory_space<vmem>>, vector<2x32xf32>
    %3 = vector.shape_cast %0 : vector<2x8x64xf32> to vector<16x64xf32>
    %c0_6 = arith.constant 0 : index
    %c0_7 = arith.constant 0 : index
    %c0_8 = arith.constant 0 : index
    %4 = vector.load %arg4[%c0_6, %c0_7, %c0_8] : memref<1x64x32xf32, #tpu.memory_space<vmem>>, vector<1x64x32xf32>
    %5 = vector.shape_cast %4 : vector<1x64x32xf32> to vector<64x32xf32>
    %cst = arith.constant dense<0.000000e+00> : vector<16x32xf32>
    %6 = tpu.matmul %3, %5, %cst {dimension_numbers = #tpu.dot_dimension_numbers<[1], [0], [0], [1], [0, 0, 1, 1], [], []>} : vector<16x64xf32>, vector<64x32xf32>, vector<16x32xf32> -> vector<16x32xf32>
    %c0_9 = arith.constant 0 : index
    %c0_10 = arith.constant 0 : index
    %c0_11 = arith.constant 0 : index
    %7 = vector.load %arg5[%c0_9, %c0_10, %c0_11] : memref<1x1x32xf32, #tpu.memory_space<vmem>>, vector<1x1x32xf32>
    %8 = vector.shape_cast %7 : vector<1x1x32xf32> to vector<1x32xf32>
    %9 = vector.broadcast %8 : vector<1x32xf32> to vector<16x32xf32>
    %10 = arith.addf %6, %9 : vector<16x32xf32>
    %11 = vector.shape_cast %10 : vector<16x32xf32> to vector<2x8x32xf32>
    %c0_12 = arith.constant 0 : index
    %c0_13 = arith.constant 0 : index
    %c0_14 = arith.constant 0 : index
    %12 = vector.load %arg8[%c0_12, %c0_13, %c0_14] : memref<1x1x32xf32, #tpu.memory_space<vmem>>, vector<1x1x32xf32>
    %13 = vector.shape_cast %12 : vector<1x1x32xf32> to vector<1x32xf32>
    %c0_15 = arith.constant 0 : index
    %c0_16 = arith.constant 0 : index
    %c0_17 = arith.constant 0 : index
    %14 = vector.load %arg9[%c0_15, %c0_16, %c0_17] : memref<1x1x1xf32, #tpu.memory_space<vmem>>, vector<1x1x1xf32>
    %15 = vector.shape_cast %14 : vector<1x1x1xf32> to vector<1x1xf32>
    %c0_18 = arith.constant 0 : index
    %c0_19 = arith.constant 0 : index
    %c0_20 = arith.constant 0 : index
    %16 = vector.load %arg6[%c0_18, %c0_19, %c0_20] : memref<1x32x32xf32, #tpu.memory_space<vmem>>, vector<1x32x32xf32>
    %17 = vector.shape_cast %16 : vector<1x32x32xf32> to vector<32x32xf32>
    %cst_21 = arith.constant dense<0.000000e+00> : vector<2x32xf32>
    %18 = tpu.matmul %2, %17, %cst_21 {dimension_numbers = #tpu.dot_dimension_numbers<[1], [0], [0], [1], [0, 0, 1, 1], [], []>} : vector<2x32xf32>, vector<32x32xf32>, vector<2x32xf32> -> vector<2x32xf32>
    %c0_22 = arith.constant 0 : index
    %c0_23 = arith.constant 0 : index
    %c0_24 = arith.constant 0 : index
    %19 = vector.load %arg7[%c0_22, %c0_23, %c0_24] : memref<1x1x32xf32, #tpu.memory_space<vmem>>, vector<1x1x32xf32>
    %20 = vector.shape_cast %19 : vector<1x1x32xf32> to vector<1x32xf32>
    %21 = vector.broadcast %20 : vector<1x32xf32> to vector<2x32xf32>
    %22 = arith.addf %18, %21 : vector<2x32xf32>
    %23 = vector.shape_cast %22 : vector<2x32xf32> to vector<2x1x32xf32>
    %24 = vector.broadcast %23 : vector<2x1x32xf32> to vector<2x8x32xf32>
    %25 = arith.addf %11, %24 : vector<2x8x32xf32>
    %26 = math.tanh %25 : vector<2x8x32xf32>
    %27 = vector.shape_cast %13 : vector<1x32xf32> to vector<1x1x32xf32>
    %28 = vector.broadcast %27 : vector<1x1x32xf32> to vector<2x8x32xf32>
    %29 = arith.mulf %26, %28 : vector<2x8x32xf32>
    %cst_25 = arith.constant dense<0.000000e+00> : vector<2x8xf32>
    %30 = vector.multi_reduction <add>, %29, %cst_25 [2] : vector<2x8x32xf32> to vector<2x8xf32>
    %31 = vector.broadcast %15 : vector<1x1xf32> to vector<2x8xf32>
    %32 = arith.addf %30, %31 : vector<2x8xf32>
    %c0_i32 = arith.constant 0 : i32
    %33 = vector.broadcast %c0_i32 : i32 to vector<2x8xi32>
    %34 = arith.cmpi eq, %1, %33 : vector<2x8xi32>
    %cst_26 = arith.constant -1.000000e+30 : f32
    %35 = vector.broadcast %cst_26 : f32 to vector<2x8xf32>
    %36 = arith.select %34, %35, %32 : vector<2x8xi1>, vector<2x8xf32>
    %cst_27 = arith.constant dense<0xFF800000> : vector<2xf32>
    %37 = vector.multi_reduction <maximumf>, %36, %cst_27 [1] : vector<2x8xf32> to vector<2xf32>
    %38 = vector.shape_cast %37 : vector<2xf32> to vector<2x1xf32>
    %39 = vector.broadcast %38 : vector<2x1xf32> to vector<2x8xf32>
    %40 = arith.subf %36, %39 : vector<2x8xf32>
    %41 = math.exp %40 : vector<2x8xf32>
    %cst_28 = arith.constant dense<0.000000e+00> : vector<2xf32>
    %42 = vector.multi_reduction <add>, %41, %cst_28 [1] : vector<2x8xf32> to vector<2xf32>
    %43 = vector.shape_cast %42 : vector<2xf32> to vector<2x1xf32>
    %44 = tpu.reciprocal %43 {approx = true} : vector<2x1xf32> -> vector<2x1xf32>
    %45 = vector.broadcast %44 : vector<2x1xf32> to vector<2x8xf32>
    %46 = arith.mulf %41, %45 : vector<2x8xf32>
    %c0_29 = arith.constant 0 : index
    %c0_30 = arith.constant 0 : index
    %c0_31 = arith.constant 0 : index
    %c0_32 = arith.constant 0 : index
    %47 = vector.load %arg16[%c0_29, %c0_30, %c0_31, %c0_32] : memref<1x2x2x8xf32, #tpu.memory_space<vmem>>, vector<1x1x2x8xf32>
    %48 = vector.shape_cast %47 : vector<1x1x2x8xf32> to vector<2x8xf32>
    %49 = vector.shape_cast %46 : vector<2x8xf32> to vector<1x1x2x8xf32>
    tpu.vector_store %arg16[%c0_29, %c0_30, %c0_31, %c0_32], %49 {strides = array<i32>} : memref<1x2x2x8xf32, #tpu.memory_space<vmem>>, vector<1x1x2x8xf32>,
    %50 = vector.extract_strided_slice %46 {offsets = [0, 0], sizes = [1, 8], strides = [1, 1]} : vector<2x8xf32> to vector<1x8xf32>
    %51 = vector.extract_strided_slice %0 {offsets = [0, 0, 0], sizes = [1, 8, 64], strides = [1, 1, 1]} : vector<2x8x64xf32> to vector<1x8x64xf32>
    %52 = vector.shape_cast %51 : vector<1x8x64xf32> to vector<8x64xf32>
    %cst_33 = arith.constant dense<0.000000e+00> : vector<1x64xf32>
    %53 = tpu.matmul %50, %52, %cst_33 {dimension_numbers = #tpu.dot_dimension_numbers<[1], [0], [0], [1], [0, 0, 1, 1], [], []>} : vector<1x8xf32>, vector<8x64xf32>, vector<1x64xf32> -> vector<1x64xf32>
    %54 = vector.extract_strided_slice %46 {offsets = [1, 0], sizes = [1, 8], strides = [1, 1]} : vector<2x8xf32> to vector<1x8xf32>
    %55 = vector.extract_strided_slice %0 {offsets = [1, 0, 0], sizes = [1, 8, 64], strides = [1, 1, 1]} : vector<2x8x64xf32> to vector<1x8x64xf32>
    %56 = vector.shape_cast %55 : vector<1x8x64xf32> to vector<8x64xf32>
    %cst_34 = arith.constant dense<0.000000e+00> : vector<1x64xf32>
    %57 = tpu.matmul %54, %56, %cst_34 {dimension_numbers = #tpu.dot_dimension_numbers<[1], [0], [0], [1], [0, 0, 1, 1], [], []>} : vector<1x8xf32>, vector<8x64xf32>, vector<1x64xf32> -> vector<1x64xf32>
    %58 = tpu.concatenate %53, %57 in 0 : vector<1x64xf32>, vector<1x64xf32> -> vector<2x64xf32>
    %cst_35 = arith.constant dense<0.000000e+00> : vector<2xf32>
    %59 = vector.multi_reduction <add>, %58, %cst_35 [1] : vector<2x64xf32> to vector<2xf32>
    %60 = vector.shape_cast %59 : vector<2xf32> to vector<2x1xf32>
    %cst_36 = arith.constant 6.400000e+01 : f32
    %61 = vector.broadcast %cst_36 : f32 to vector<2x1xf32>
    %62 = arith.divf %60, %61 : vector<2x1xf32>
    %63 = vector.broadcast %62 : vector<2x1xf32> to vector<2x64xf32>
    %64 = arith.subf %58, %63 : vector<2x64xf32>
    %65 = arith.mulf %64, %64 : vector<2x64xf32>
    %cst_37 = arith.constant dense<0.000000e+00> : vector<2xf32>
    %66 = vector.multi_reduction <add>, %65, %cst_37 [1] : vector<2x64xf32> to vector<2xf32>
    %67 = vector.shape_cast %66 : vector<2xf32> to vector<2x1xf32>
    %cst_38 = arith.constant 6.400000e+01 : f32
    %68 = vector.broadcast %cst_38 : f32 to vector<2x1xf32>
    %69 = arith.divf %67, %68 : vector<2x1xf32>
    %70 = vector.broadcast %62 : vector<2x1xf32> to vector<2x64xf32>
    %71 = arith.subf %58, %70 : vector<2x64xf32>
    %cst_39 = arith.constant 9.99999974E-6 : f32
    %72 = vector.broadcast %cst_39 : f32 to vector<2x1xf32>
    %73 = arith.addf %69, %72 : vector<2x1xf32>
    %74 = math.rsqrt %73 : vector<2x1xf32>
    %75 = vector.broadcast %74 : vector<2x1xf32> to vector<2x64xf32>
    %76 = arith.mulf %71, %75 : vector<2x64xf32>
    %c0_40 = arith.constant 0 : index
    %c0_41 = arith.constant 0 : index
    %c0_42 = arith.constant 0 : index
    %77 = vector.load %arg14[%c0_40, %c0_41, %c0_42] : memref<1x1x64xf32, #tpu.memory_space<vmem>>, vector<1x1x64xf32>
    %78 = vector.shape_cast %77 : vector<1x1x64xf32> to vector<1x64xf32>
    %79 = vector.broadcast %78 : vector<1x64xf32> to vector<2x64xf32>
    %80 = arith.mulf %76, %79 : vector<2x64xf32>
    %c0_43 = arith.constant 0 : index
    %c0_44 = arith.constant 0 : index
    %c0_45 = arith.constant 0 : index
    %81 = vector.load %arg15[%c0_43, %c0_44, %c0_45] : memref<1x1x64xf32, #tpu.memory_space<vmem>>, vector<1x1x64xf32>
    %82 = vector.shape_cast %81 : vector<1x1x64xf32> to vector<1x64xf32>
    %83 = vector.broadcast %82 : vector<1x64xf32> to vector<2x64xf32>
    %84 = arith.addf %80, %83 : vector<2x64xf32>
    %c0_46 = arith.constant 0 : index
    %c0_47 = arith.constant 0 : index
    %c0_48 = arith.constant 0 : index
    %85 = vector.load %arg10[%c0_46, %c0_47, %c0_48] : memref<1x64x96xf32, #tpu.memory_space<vmem>>, vector<1x64x96xf32>
    %86 = vector.shape_cast %85 : vector<1x64x96xf32> to vector<64x96xf32>
    %cst_49 = arith.constant dense<0.000000e+00> : vector<2x96xf32>
    %87 = tpu.matmul %84, %86, %cst_49 {dimension_numbers = #tpu.dot_dimension_numbers<[1], [0], [0], [1], [0, 0, 1, 1], [], []>} : vector<2x64xf32>, vector<64x96xf32>, vector<2x96xf32> -> vector<2x96xf32>
    %c0_50 = arith.constant 0 : index
    %c0_51 = arith.constant 0 : index
    %c0_52 = arith.constant 0 : index
    %88 = vector.load %arg11[%c0_50, %c0_51, %c0_52] : memref<1x1x96xf32, #tpu.memory_space<vmem>>, vector<1x1x96xf32>
    %89 = vector.shape_cast %88 : vector<1x1x96xf32> to vector<1x96xf32>
    %90 = vector.broadcast %89 : vector<1x96xf32> to vector<2x96xf32>
    %91 = arith.addf %87, %90 : vector<2x96xf32>
    %c0_53 = arith.constant 0 : index
    %c0_54 = arith.constant 0 : index
    %c0_55 = arith.constant 0 : index
    %92 = vector.load %arg12[%c0_53, %c0_54, %c0_55] : memref<1x32x96xf32, #tpu.memory_space<vmem>>, vector<1x32x96xf32>
    %93 = vector.shape_cast %92 : vector<1x32x96xf32> to vector<32x96xf32>
    %cst_56 = arith.constant dense<0.000000e+00> : vector<2x96xf32>
    %94 = tpu.matmul %2, %93, %cst_56 {dimension_numbers = #tpu.dot_dimension_numbers<[1], [0], [0], [1], [0, 0, 1, 1], [], []>} : vector<2x32xf32>, vector<32x96xf32>, vector<2x96xf32> -> vector<2x96xf32>
    %c0_57 = arith.constant 0 : index
    %c0_58 = arith.constant 0 : index
    %c0_59 = arith.constant 0 : index
    %95 = vector.load %arg13[%c0_57, %c0_58, %c0_59] : memref<1x1x96xf32, #tpu.memory_space<vmem>>, vector<1x1x96xf32>
    %96 = vector.shape_cast %95 : vector<1x1x96xf32> to vector<1x96xf32>
    %97 = vector.broadcast %96 : vector<1x96xf32> to vector<2x96xf32>
    %98 = arith.addf %94, %97 : vector<2x96xf32>
    %99 = vector.extract_strided_slice %91 {offsets = [0, 0], sizes = [2, 32], strides = [1, 1]} : vector<2x96xf32> to vector<2x32xf32>
    %100 = vector.extract_strided_slice %98 {offsets = [0, 0], sizes = [2, 32], strides = [1, 1]} : vector<2x96xf32> to vector<2x32xf32>
    %101 = arith.addf %99, %100 : vector<2x32xf32>
    %102 = arith.negf %101 : vector<2x32xf32>
    %103 = math.exp %102 : vector<2x32xf32>
    %cst_60 = arith.constant 1.000000e+00 : f32
    %104 = vector.broadcast %cst_60 : f32 to vector<2x32xf32>
    %105 = arith.addf %104, %103 : vector<2x32xf32>
    %106 = arith.divf %104, %105 : vector<2x32xf32>
    %107 = vector.extract_strided_slice %91 {offsets = [0, 32], sizes = [2, 32], strides = [1, 1]} : vector<2x96xf32> to vector<2x32xf32>
    %108 = vector.extract_strided_slice %98 {offsets = [0, 32], sizes = [2, 32], strides = [1, 1]} : vector<2x96xf32> to vector<2x32xf32>
    %109 = arith.addf %107, %108 : vector<2x32xf32>
    %110 = arith.negf %109 : vector<2x32xf32>
    %111 = math.exp %110 : vector<2x32xf32>
    %cst_61 = arith.constant 1.000000e+00 : f32
    %112 = vector.broadcast %cst_61 : f32 to vector<2x32xf32>
    %113 = arith.addf %112, %111 : vector<2x32xf32>
    %114 = arith.divf %112, %113 : vector<2x32xf32>
    %115 = vector.extract_strided_slice %91 {offsets = [0, 64], sizes = [2, 32], strides = [1, 1]} : vector<2x96xf32> to vector<2x32xf32>
    %116 = vector.extract_strided_slice %98 {offsets = [0, 64], sizes = [2, 32], strides = [1, 1]} : vector<2x96xf32> to vector<2x32xf32>
    %117 = arith.mulf %106, %116 : vector<2x32xf32>
    %118 = arith.addf %115, %117 : vector<2x32xf32>
    %119 = math.tanh %118 : vector<2x32xf32>
    %cst_62 = arith.constant 1.000000e+00 : f32
    %120 = vector.broadcast %cst_62 : f32 to vector<2x32xf32>
    %121 = arith.subf %120, %114 : vector<2x32xf32>
    %122 = arith.mulf %121, %119 : vector<2x32xf32>
    %123 = arith.mulf %114, %2 : vector<2x32xf32>
    %124 = arith.addf %122, %123 : vector<2x32xf32>
    %c0_63 = arith.constant 0 : index
    %c0_64 = arith.constant 0 : index
    %c0_65 = arith.constant 0 : index
    %125 = vector.load %arg6[%c0_63, %c0_64, %c0_65] : memref<1x32x32xf32, #tpu.memory_space<vmem>>, vector<1x32x32xf32>
    %126 = vector.shape_cast %125 : vector<1x32x32xf32> to vector<32x32xf32>
    %cst_66 = arith.constant dense<0.000000e+00> : vector<2x32xf32>
    %127 = tpu.matmul %124, %126, %cst_66 {dimension_numbers = #tpu.dot_dimension_numbers<[1], [0], [0], [1], [0, 0, 1, 1], [], []>} : vector<2x32xf32>, vector<32x32xf32>, vector<2x32xf32> -> vector<2x32xf32>
    %c0_67 = arith.constant 0 : index
    %c0_68 = arith.constant 0 : index
    %c0_69 = arith.constant 0 : index
    %128 = vector.load %arg7[%c0_67, %c0_68, %c0_69] : memref<1x1x32xf32, #tpu.memory_space<vmem>>, vector<1x1x32xf32>
    %129 = vector.shape_cast %128 : vector<1x1x32xf32> to vector<1x32xf32>
    %130 = vector.broadcast %129 : vector<1x32xf32> to vector<2x32xf32>
    %131 = arith.addf %127, %130 : vector<2x32xf32>
    %132 = vector.shape_cast %131 : vector<2x32xf32> to vector<2x1x32xf32>
    %133 = vector.broadcast %132 : vector<2x1x32xf32> to vector<2x8x32xf32>
    %134 = arith.addf %11, %133 : vector<2x8x32xf32>
    %135 = math.tanh %134 : vector<2x8x32xf32>
    %136 = vector.shape_cast %13 : vector<1x32xf32> to vector<1x1x32xf32>
    %137 = vector.broadcast %136 : vector<1x1x32xf32> to vector<2x8x32xf32>
    %138 = arith.mulf %135, %137 : vector<2x8x32xf32>
    %cst_70 = arith.constant dense<0.000000e+00> : vector<2x8xf32>
    %139 = vector.multi_reduction <add>, %138, %cst_70 [2] : vector<2x8x32xf32> to vector<2x8xf32>
    %140 = vector.broadcast %15 : vector<1x1xf32> to vector<2x8xf32>
    %141 = arith.addf %139, %140 : vector<2x8xf32>
    %c0_i32_71 = arith.constant 0 : i32
    %142 = vector.broadcast %c0_i32_71 : i32 to vector<2x8xi32>
    %143 = arith.cmpi eq, %1, %142 : vector<2x8xi32>
    %cst_72 = arith.constant -1.000000e+30 : f32
    %144 = vector.broadcast %cst_72 : f32 to vector<2x8xf32>
    %145 = arith.select %143, %144, %141 : vector<2x8xi1>, vector<2x8xf32>
    %cst_73 = arith.constant dense<0xFF800000> : vector<2xf32>
    %146 = vector.multi_reduction <maximumf>, %145, %cst_73 [1] : vector<2x8xf32> to vector<2xf32>
    %147 = vector.shape_cast %146 : vector<2xf32> to vector<2x1xf32>
    %148 = vector.broadcast %147 : vector<2x1xf32> to vector<2x8xf32>
    %149 = arith.subf %145, %148 : vector<2x8xf32>
    %150 = math.exp %149 : vector<2x8xf32>
    %cst_74 = arith.constant dense<0.000000e+00> : vector<2xf32>
    %151 = vector.multi_reduction <add>, %150, %cst_74 [1] : vector<2x8xf32> to vector<2xf32>
    %152 = vector.shape_cast %151 : vector<2xf32> to vector<2x1xf32>
    %153 = tpu.reciprocal %152 {approx = true} : vector<2x1xf32> -> vector<2x1xf32>
    %154 = vector.broadcast %153 : vector<2x1xf32> to vector<2x8xf32>
    %155 = arith.mulf %150, %154 : vector<2x8xf32>
    %c0_75 = arith.constant 0 : index
    %c1 = arith.constant 1 : index
    %c0_76 = arith.constant 0 : index
    %c0_77 = arith.constant 0 : index
    %156 = vector.load %arg16[%c0_75, %c1, %c0_76, %c0_77] : memref<1x2x2x8xf32, #tpu.memory_space<vmem>>, vector<1x1x2x8xf32>
    %157 = vector.shape_cast %156 : vector<1x1x2x8xf32> to vector<2x8xf32>
    %158 = vector.shape_cast %155 : vector<2x8xf32> to vector<1x1x2x8xf32>
    tpu.vector_store %arg16[%c0_75, %c1, %c0_76, %c0_77], %158 {strides = array<i32>} : memref<1x2x2x8xf32, #tpu.memory_space<vmem>>, vector<1x1x2x8xf32>,
    return
  }
  func.func @transform_0(%arg0: i32) -> (i32, i32, i32) {
    %c0_i32 = arith.constant 0 : i32
    %c0_i32_0 = arith.constant 0 : i32
    %c0_i32_1 = arith.constant 0 : i32
    %c0_i32_2 = arith.constant 0 : i32
    return %c0_i32, %c0_i32_0, %c0_i32_1 : i32, i32, i32
  }
  func.func @transform_1(%arg0: i32) -> (i32, i32) {
    %c0_i32 = arith.constant 0 : i32
    %c0_i32_0 = arith.constant 0 : i32
    %c0_i32_1 = arith.constant 0 : i32
    return %c0_i32, %c0_i32_0 : i32, i32
  }
  func.func @transform_2(%arg0: i32) -> (i32, i32) {
    %c0_i32 = arith.constant 0 : i32
    %c0_i32_0 = arith.constant 0 : i32
    %c0_i32_1 = arith.constant 0 : i32
    return %c0_i32, %c0_i32_0 : i32, i32
  }
  func.func @transform_3(%arg0: i32) -> (i32, i32, i32) {
    %c0_i32 = arith.constant 0 : i32
    %c0_i32_0 = arith.constant 0 : i32
    %c0_i32_1 = arith.constant 0 : i32
    return %arg0, %c0_i32, %c0_i32_0 : i32, i32, i32
  }
  func.func @transform_4(%arg0: i32) -> (i32, i32, i32) {
    %c0_i32 = arith.constant 0 : i32
    %c0_i32_0 = arith.constant 0 : i32
    %c0_i32_1 = arith.constant 0 : i32
    return %arg0, %c0_i32, %c0_i32_0 : i32, i32, i32
  }
  func.func @transform_5(%arg0: i32) -> (i32, i32, i32) {
    %c0_i32 = arith.constant 0 : i32
    %c0_i32_0 = arith.constant 0 : i32
    %c0_i32_1 = arith.constant 0 : i32
    return %arg0, %c0_i32, %c0_i32_0 : i32, i32, i32
  }
  func.func @transform_6(%arg0: i32) -> (i32, i32, i32) {
    %c0_i32 = arith.constant 0 : i32
    %c0_i32_0 = arith.constant 0 : i32
    %c0_i32_1 = arith.constant 0 : i32
    return %arg0, %c0_i32, %c0_i32_0 : i32, i32, i32
  }
  func.func @transform_7(%arg0: i32) -> (i32, i32, i32) {
    %c0_i32 = arith.constant 0 : i32
    %c0_i32_0 = arith.constant 0 : i32
    %c0_i32_1 = arith.constant 0 : i32
    return %arg0, %c0_i32, %c0_i32_0 : i32, i32, i32
  }
  func.func @transform_8(%arg0: i32) -> (i32, i32, i32) {
    %c0_i32 = arith.constant 0 : i32
    %c0_i32_0 = arith.constant 0 : i32
    %c0_i32_1 = arith.constant 0 : i32
    return %arg0, %c0_i32, %c0_i32_0 : i32, i32, i32
  }
  func.func @transform_9(%arg0: i32) -> (i32, i32, i32) {
    %c0_i32 = arith.constant 0 : i32
    %c0_i32_0 = arith.constant 0 : i32
    %c0_i32_1 = arith.constant 0 : i32
    return %arg0, %c0_i32, %c0_i32_0 : i32, i32, i32
  }
  func.func @transform_10(%arg0: i32) -> (i32, i32, i32) {
    %c0_i32 = arith.constant 0 : i32
    %c0_i32_0 = arith.constant 0 : i32
    %c0_i32_1 = arith.constant 0 : i32
    return %arg0, %c0_i32, %c0_i32_0 : i32, i32, i32
  }
  func.func @transform_11(%arg0: i32) -> (i32, i32, i32) {
    %c0_i32 = arith.constant 0 : i32
    %c0_i32_0 = arith.constant 0 : i32
    %c0_i32_1 = arith.constant 0 : i32
    return %arg0, %c0_i32, %c0_i32_0 : i32, i32, i32
  }
  func.func @transform_12(%arg0: i32) -> (i32, i32, i32) {
    %c0_i32 = arith.constant 0 : i32
    %c0_i32_0 = arith.constant 0 : i32
    %c0_i32_1 = arith.constant 0 : i32
    return %arg0, %c0_i32, %c0_i32_0 : i32, i32, i32
  }
  func.func @transform_13(%arg0: i32) -> (i32, i32, i32) {
    %c0_i32 = arith.constant 0 : i32
    %c0_i32_0 = arith.constant 0 : i32
    %c0_i32_1 = arith.constant 0 : i32
    return %arg0, %c0_i32, %c0_i32_0 : i32, i32, i32
  }
  func.func @transform_14(%arg0: i32) -> (i32, i32, i32) {
    %c0_i32 = arith.constant 0 : i32
    %c0_i32_0 = arith.constant 0 : i32
    %c0_i32_1 = arith.constant 0 : i32
    return %arg0, %c0_i32, %c0_i32_0 : i32, i32, i32
  }
  func.func @transform_15(%arg0: i32) -> (i32, i32, i32, i32) {
    %c0_i32 = arith.constant 0 : i32
    %c0_i32_0 = arith.constant 0 : i32
    %c0_i32_1 = arith.constant 0 : i32
    %c0_i32_2 = arith.constant 0 : i32
    return %arg0, %c0_i32, %c0_i32_0, %c0_i32_1 : i32, i32, i32, i32
  }
}

</mosaic_0001>

<bundles_post_ra>
// kernel: boundary_pointer.1
= control target key start
LH: loop header
LB: loop body
LE: loop exit
PB: predicated region body
PF: predicated region fallthrough
CT: control target
= control target key end

     0   :  { %s1946_s18 = smov 0   ;;  %s2173_s0 = inlined_call_operand.vmem [shape: f32[2,8,64], index: 0, kind: input, shape index: {}]   ;;  %s2174_s1 = inlined_call_operand.vmem [shape: s32[2,8], index: 1, kind: input, shape index: {}]   ;;  %s2175_s2 = inlined_call_operand.vmem [shape: f32[2,32], index: 2, kind: input, shape index: {}]   ;;  %s2176_s3 = inlined_call_operand.vmem [shape: f32[2,64,32], index: 3, kind: input, shape index: {}]   ;;  %s2177_s4 = inlined_call_operand.vmem [shape: f32[2,1,32], index: 4, kind: input, shape index: {}]   ;;  %s2178_s5 = inlined_call_operand.vmem [shape: f32[2,32,32], index: 5, kind: input, shape index: {}]   ;;  %s2179_s6 = inlined_call_operand.vmem [shape: f32[2,1,32], index: 6, kind: input, shape index: {}]   ;;  %s2180_s7 = inlined_call_operand.vmem [shape: f32[2,1,32], index: 7, kind: input, shape index: {}]   ;;  %s2181_s8 = inlined_call_operand.vmem [shape: f32[2,1,1], index: 8, kind: input, shape index: {}]   ;;  %s2182_s9 = inlined_call_operand.vmem [shape: f32[2,64,96], index: 9, kind: input, shape index: {}]   ;;  %s2183_s10 = inlined_call_operand.vmem [shape: f32[2,1,96], index: 10, kind: input, shape index: {}]   ;;  %s2184_s11 = inlined_call_operand.vmem [shape: f32[2,32,96], index: 11, kind: input, shape index: {}]   ;;  %s2185_s12 = inlined_call_operand.vmem [shape: f32[2,1,96], index: 12, kind: input, shape index: {}]   ;;  %s2186_s13 = inlined_call_operand.vmem [shape: f32[2,1,64], index: 13, kind: input, shape index: {}]   ;;  %s2187_s14 = inlined_call_operand.vmem [shape: f32[2,1,64], index: 14, kind: input, shape index: {}]   ;;  %s2188_s15 = inlined_call_operand.vmem [shape: f32[2,2,2,8], index: 15, kind: output, shape index: {}]  }
   0x1 LB: > { %s1650_s19 = sadd.s32 4294967295, %s1857_s18   ;;  %p1654_p0 = scmp.ge.s32.totalorder %s1857_s18, 1  ;;  %s1857_s18 = sphi %s1946_s18, %s25_s18  }
   0x2   : > { %p531_p1 = scmp.lt.s32.totalorder %s1857_s18, 3 }
   0x4   : > { %p532_p2 = pnand %p1654_p0, %p531_p1 }
   0x5   : > { %p618_p3 = scmp.lt.s32.totalorder (!%p532_p2), %s1650_s19, 1  ;;  %s1864_s24 = smov (!%p532_p2), 96  }
   0x6   : > { %535 = sbr.rel (%p532_p2) target bundleno = 2494 (0x9be), region = 80 }
   0xb   : > { %v1859_v0 = vmov 0.0   ;;  %vm1860_vm0 = vmmov 0   ;;  %v667_v1 = vld [vmem:[%s2173_s0] sm:$0xff]  ;;  %vm686_vm1 = vcmask 523264   ;;  %s2190_s19 = smov (!%p618_p3, %s1650_s19), 1  ;;  %vm781_vm2 = vcmask 261120  }
   0xc   : > { %1748 = vmatprep.subr.mxu1 %v1859_v0  ;;  %1756 = vmatprep.mubr.msk.f32.mxu1 %vm1860_vm0, %v1859_v0  ;;  %s1686_s22 = sshll.u32 %s2190_s19, 6  ;;  %s1687_s23 = sshll.u32 %s2190_s19, 5  ;;  %v1998_v11 = vld [vmem:[%s2175_s2] sm:$0x3]  ;;  %v2014_v15 = vld [vmem:[%s2173_s0 + $0x8] sm:$0xff]  ;;  %v859_v16 = vlaneseq  ;;  %v1861_v19 = vmov 0  }
   0xd   : > { %1745 = vmatprep.mubr.msk.f32.mxu0 %vm686_vm1, %v667_v1  ;;  %s1970_s26 = scalar_lea.vmem %s2176_s3, %s1686_s22  ;;  %s630_s29 = scalar_lea.vmem %s2178_s5, %s1687_s23  ;;  %1825 = vset.pattern.permute.xlu1 %v1861_v19  ;;  %v1862_v22 = vmov 1966171168   ;;  %v2069_v55 = vld [vmem:[%s2174_s1] sm:$0x3]  ;;  %vm930_vm3 = vcmask 1041409   ;;  %vm934_vm5 = vcmask 58368  }
   0xe   : > { %v678_v2 = vld [vmem:[%s1970_s26 + $0x38] sm:$0xff]  ;;  %v677_v3 = vld [vmem:[%s1970_s26 + $0x30] sm:$0xff]  ;;  %v676_v6 = vld [vmem:[%s1970_s26 + $0x28] sm:$0xff]  ;;  %v860_v17 = vshrl.u32 %v859_v16, 7  ;;  %s639_s25 = scalar_lea.vmem %s2181_s8, %s2190_s19  ;;  %v921_v18 = vand.u32 127, %v859_v16  ;;  %1826 = vset.pattern.permute.xlu0 %v1861_v19  ;;  %v857_v23 = vunpack.c.l.s4 %v1862_v22  ;;  %s633_s28 = scalar_lea.vmem %s2179_s6, %s2190_s19  ;;  %vm917_vm4 = vcmp.eq.s32.totalorder %v2069_v55, 0 }
   0xf   : > { %1729 = vmatprep.subr.mxu0 %v678_v2  ;;  %v1979_v4 = vld [vmem:[%s630_s29 + $0x18] sm:$0xff]  ;;  %v1981_v5 = vld [vmem:[%s630_s29 + $0x10] sm:$0xff]  ;;  %v1986_v7 = vld [vmem:[%s630_s29 + $0x8] sm:$0xff]  ;;  %s625_s16 = scalar_lea.vmem %s2177_s4, %s2190_s19  ;;  %s636_s21 = scalar_lea.vmem %s2180_s7, %s2190_s19  ;;  %vm947_vm6 = vcmask 64512   ;;  %vm1097_vm7 = vcmask 1040384   ;;  %vm1099_vm8 = vcmask 517120  }
  0x10   : > { %1730 = vmatpush3.msra.mxu0 %v678_v2  ;;  %1749 = vmatpush3.msra.mxu1 %v1979_v4  ;;  %v675_v8 = vld [vmem:[%s1970_s26 + $0x20] sm:$0xff]  ;;  %v674_v10 = vld [vmem:[%s1970_s26 + $0x18] sm:$0xff]  ;;  %v673_v12 = vld [vmem:[%s1970_s26 + $0x10] sm:$0xff]  ;;  %v2025_v21 = vsub.s32 %v921_v18, %v860_v17  ;;  %v858_v24 = vunpack.c.0.s8 %v857_v23  ;;  %v2042_v33 = vsub.s32 0, %v860_v17  ;;  %s652_s17 = scalar_lea.vmem %s2184_s11, %s1687_s23  ;;  %s658_s30 = scalar_lea.vmem %s2186_s13, %s2190_s19 }
  0x11   : > { %1731 = vmatprep.subr.mxu0 %v677_v3  ;;  %1750 = vmatprep.subr.mxu1 %v1859_v0  ;;  %v1991_v9 = vld [vmem:[%s630_s29] sm:$0xff]  ;;  %v672_v13 = vld [vmem:[%s1970_s26 + $0x8] sm:$0xff]  ;;  %v1220_v22 = vld [vmem:[%s652_s17 + $0x10] sm:$0xff]  ;;  %s661_s23 = scalar_lea.vmem %s2187_s14, %s2190_s19 }
  0x12   : > { %1732 = vmatpush3.msra.mxu0 %v677_v3  ;;  %1751 = vmatpush3.msra.mxu1 %v1981_v5  ;;  %v671_v14 = vld [vmem:[%s1970_s26] sm:$0xff]  ;;  %v2033_v26 = vsub.s32 %v858_v24, %v860_v17  ;;  %s1690_s26 = sshll.u32 %s2190_s19, 2  ;;  %v1219_v23 = vld [vmem:[%s652_s17 + $0x8] sm:$0xff] }
  0x13   : > { %1733 = vmatprep.subr.mxu0 %v676_v6  ;;  %1752 = vmatprep.subr.mxu1 %v1859_v0  ;;  %v1671_v20 = vld [vmem:[%s639_s25] ss:$0 sm:$0xff]  ;;  %s2084_s29 = scalar_lea.vmem %s2188_s15, %s1690_s26  ;;  %s655_s25 = scalar_lea.vmem %s2185_s12, %s2190_s19 }
  0x14   : > { %1734 = vmatpush3.msra.mxu0 %v676_v6  ;;  %1753 = vmatpush3.msra.mxu1 %v1986_v7  ;;  %v2031_v25 = vld [vmem:[%s633_s28] ss:$0 sm:$0xff]  ;;  %s1863_s26 = smov 64  }
  0x15   : > { %1735 = vmatprep.subr.mxu0 %v675_v8  ;;  %1754 = vmatprep.subr.mxu1 %v1859_v0  ;;  %v1665_v34 = vld [vmem:[%s625_s16] ss:$0 sm:$0xff] }
  0x16   : > { %1736 = vmatpush3.msra.mxu0 %v675_v8  ;;  %1755 = vmatpush3.msra.mxu1 %v1991_v9  ;;  %v2057_v46 = vld [vmem:[%s636_s21] ss:$0 sm:$0xff]  ;;  %s644_s21 = scalar_lea.vmem %s2182_s9, %s1686_s22  ;;  %s647_s22 = scalar_lea.vmem %s2183_s10, %s2190_s19 }
  0x17   : > { %1737 = vmatprep.subr.mxu0 %v674_v10  ;;  %1757 = vmatmul.mubr.msk.f32.vlgmr.msra.gmra.mxu1 %vm781_vm2, %v1998_v11  ;;  %v1218_v24 = vld [vmem:[%s652_s17] sm:$0xff]  ;;  %s1865_s19 = smov 32  }
  0x18   : > { %1738 = vmatpush3.msra.mxu0 %v674_v10  ;;  %1759 = vmatprep.subr.mxu1 %v1859_v0 }
  0x19   : > { %1739 = vmatprep.subr.mxu0 %v673_v12  ;;  %1760 = vmatpush3.msra.mxu1 %v667_v1 }
  0x1a   : > { %1740 = vmatpush3.msra.mxu0 %v673_v12  ;;  %1761 = vmatprep.mubr.msk.f32.mxu1 %vm1860_vm0, %v1859_v0 }
  0x1b   : > { %1741 = vmatprep.subr.mxu0 %v672_v13  ;;  %1764 = vmatprep.subr.mxu1 %v1859_v0 }
  0x1c   : > { %1742 = vmatpush3.msra.mxu0 %v672_v13  ;;  %912 = vperm.xlu1 %1825, %v1671_v20   ;;  %v1221_v20 = vld [vmem:[%s652_s17 + $0x18] sm:$0xff] }
  0x1d   : > { %1743 = vmatprep.subr.mxu0 %v671_v14 }
  0x1e   : > { %1744 = vmatpush3.msra.mxu0 %v671_v14 }
  0x1f   : > { %1746 = vmatmul.mubr.msk.f32.vlgmr.msra.gmra.mxu0 %vm686_vm1, %v2014_v15  ;;  %1769 = vmatprep.subr.mxu0 %v1859_v0 }
  0x20   : > { %1785 = vmatprep.mubr.msk.f32.mxu0 %vm1860_vm0, %v1859_v0 }
  0x97   : > { %v2063_v51 = vpop.permute.xlu1 %912 }
  0xd7   : > { %v851_v27 = vpop.f32.mrf.mxu1 }
  0xd8   : > { %v852_v28 = vadd.f32 %v2031_v25, %v851_v27 }
  0xd9   : > { %v1758_v29 = vpop.f32.mrf.mxu1 }
  0xda   : > { %v862_v30 = vrot.slane %v852_v28, %v2033_v26 }
  0xdc   : > { %v863_v31 = vcombine.high %v862_v30, %v862_v30  ;;  %v870_v32 = vrot.slane %v862_v30, %v2033_v26 }
  0xde   : > { %v877_v35 = vrot.slane %v863_v31, %v2033_v26  ;;  %v881_v39 = vrot.slane %v870_v32, %v2042_v33  ;;  %v1134_v31 = vld [vmem:[%s644_s21 + $0x20] sm:$0xff]  ;;  %v1133_v32 = vld [vmem:[%s644_s21 + $0x18] sm:$0xff] }
  0xdf   : > { %v1747_v36 = vpop.f32.mrf.mxu0 }
  0xe0   : > { %v2045_v37 = vadd.f32 %v1747_v36, %v1665_v34  ;;  %v885_v38 = vrot.slane %v877_v35, %v2042_v33  ;;  %v1131_v35 = vld [vmem:[%s644_s21 + $0x8] sm:$0xff]  ;;  %v1130_v36 = vld [vmem:[%s644_s21] sm:$0xff] }
  0xe1   : > { %v759_v40 = vpop.f32.mrf.mxu0 }
  0xe2   : > { %v889_v41 = vadd.f32 %v885_v38, %v2045_v37  ;;  %v2050_v42 = vadd.f32 %v1665_v34, %v759_v40  ;;  %v1132_v34 = vld [vmem:[%s644_s21 + $0x10] sm:$0xff]  ;;  %v1678_v38 = vld [vmem:[%s655_s25] ss:$0 sm:$0xff] }
  0xe4   : > { %v888_v43 = vadd.f32 %v881_v39, %v2050_v42  ;;  %1827 = vtanh.f32 %v889_v41 }
  0xe6   : > { %1829 = vtanh.f32 %v888_v43 }
  0xf1   : > { %v1828_v44 = vpop.eup %1827 }
  0xf2   : > { %v899_v49 = vmul.f32 %v1828_v44, %v2057_v46 }
  0xf3   : > { %v1830_v45 = vpop.eup %1829 }
  0xf4   : > { %v898_v47 = vmul.f32 %v1830_v45, %v2057_v46  ;;  %v903_v50 = vsel %vm781_vm2, %v899_v49, 0.0  ;;  %v1675_v49 = vld [vmem:[%s661_s23] ss:$0 sm:$0xff] }
  0xf6   : > { %v900_v48 = vsel %vm781_vm2, %v898_v47, 0.0  ;;  %v1674_v47 = vld [vmem:[%s658_s30] ss:$0 sm:$0xff] }
  0xf7   : > { %901 = vadd.xlane.f32.xlu0 %v900_v48 }
  0xfb   : > { %904 = vadd.xlane.f32.xlu0 %v903_v50 }
 0x180   : > { %v902_v52 = vpop.xlane.xlu0 %901 }
 0x181   : > { %v915_v53 = vadd.f32 %v2063_v51, %v902_v52 }
 0x183   : > { %v925_v57 = vrot.slane %v915_v53, %v2025_v21  ;;  %v1676_v53 = vld [vmem:[%s647_s22] ss:$0 sm:$0xff] }
 0x184   : > { %v905_v54 = vpop.xlane.xlu0 %904 }
 0x185   : > { %v916_v56 = vadd.f32 %v2063_v51, %v905_v54 }
 0x187   : > { %v929_v58 = vrot.slane %v916_v56, %v2025_v21 }
 0x189   : > { %v931_v59 = vsel %vm930_vm3, %v929_v58, %v925_v57 }
 0x18a   : > { %v933_v60 = vsel %vm917_vm4, -1e+30, %v931_v59 }
 0x18b   : > { %v935_v61 = vsel %vm934_vm5, %v933_v60, -inf }
 0x18c   : > { %936 = vmax.xlane.f32.xlu1 %v935_v61 }
 0x215   : > { %v937_v62 = vpop.xlane.xlu1 %936 }
 0x216   : > { %v938_v63 = vsub.f32 %v933_v60, %v937_v62 }
 0x218   : > { %v939_v1 = vmul.f32 1.442695, %v938_v63 }
 0x21a   : > { %1831 = vpow2.f32 %v939_v1 }
 0x227   : > { %v1832_v2 = vpop.eup %1831 }
 0x228   : > { %v941_v3 = vsel %vm934_vm5, %v1832_v2, 0.0 }
 0x229   : > { %942 = vadd.xlane.f32.xlu0 %v941_v3 }
 0x2b2   : > { %v943_v6 = vpop.xlane.xlu0 %942 }
 0x2b3   : > { %1833 = vrcp.f32 %v943_v6 }
 0x2c0   : > { %v1834_v8 = vpop.eup %1833 }
 0x2c1   : > { %v945_v10 = vmul.f32 %v1834_v8, %v1832_v2 }
 0x2c3   : > { %946 = vst.msk [vmem:[%s2084_s29] sm:$0x3] %vm934_vm5, %v945_v10  ;;  %1762 = vmatmul.mubr.msk.f32.vlgmr.msra.gmra.mxu1 %vm947_vm6, %v945_v10  ;;  %v1021_v12 = vrot.slane %v945_v10, 1 }
 0x2c4   : > { %1765 = vmatpush3.msra.mxu1 %v2014_v15  ;;  %1766 = vmatprep.mubr.msk.f32.mxu1 %vm1860_vm0, %v1859_v0 }
 0x2c5   : > { %1788 = vmatprep.subr.mxu1 %v1859_v0 }
 0x2c7   : > { %1767 = vmatmul.mubr.msk.f32.vlgmr.msra.gmra.mxu1 %vm947_vm6, %v1021_v12 }
 0x2c8   : > { %1796 = vmatprep.mubr.msk.f32.mxu1 %vm1860_vm0, %v1859_v0  ;;  %1789 = vmatpush3.msra.mxu1 %v1221_v20 }
 0x2c9   : > { %1790 = vmatprep.subr.mxu1 %v1859_v0 }
 0x2ca   : > { %1791 = vmatpush3.msra.mxu1 %v1220_v22 }
 0x2cb   : > { %1792 = vmatprep.subr.mxu1 %v1859_v0 }
 0x2cc   : > { %1793 = vmatpush3.msra.mxu1 %v1219_v23 }
 0x2cd   : > { %1794 = vmatprep.subr.mxu1 %v1859_v0 }
 0x2ce   : > { %1795 = vmatpush3.msra.mxu1 %v1218_v24 }
 0x2cf   : > { %1797 = vmatmul.mubr.msk.f32.vlgmr.msra.gmra.mxu1 %vm781_vm2, %v1998_v11  ;;  %1799 = vmatprep.subr.mxu1 %v1859_v0 }
 0x2d0   : > { %1800 = vmatpush3.msra.mxu1 %v1979_v4  ;;  %1807 = vmatprep.mubr.msk.f32.mxu1 %vm1860_vm0, %v1859_v0 }
 0x2d1   : > { %1801 = vmatprep.subr.mxu1 %v1859_v0 }
 0x2d2   : > { %1802 = vmatpush3.msra.mxu1 %v1981_v5  ;;  %v1137_v5 = vld [vmem:[%s644_s21 + $0x38] sm:$0xff] }
 0x2d3   : > { %1803 = vmatprep.subr.mxu1 %v1859_v0  ;;  %1770 = vmatpush3.msra.mxu0 %v1137_v5 }
 0x2d4   : > { %1804 = vmatpush3.msra.mxu1 %v1986_v7  ;;  %1771 = vmatprep.subr.mxu0 %v1859_v0  ;;  %v1136_v7 = vld [vmem:[%s644_s21 + $0x30] sm:$0xff] }
 0x2d5   : > { %1805 = vmatprep.subr.mxu1 %v1859_v0  ;;  %1772 = vmatpush3.msra.mxu0 %v1136_v7 }
 0x2d6   : > { %1806 = vmatpush3.msra.mxu1 %v1991_v9  ;;  %1773 = vmatprep.subr.mxu0 %v1859_v0  ;;  %v1135_v9 = vld [vmem:[%s644_s21 + $0x28] sm:$0xff] }
 0x2d7   : > { %1774 = vmatpush3.msra.mxu0 %v1135_v9 }
 0x2d8   : > { %1775 = vmatprep.subr.mxu0 %v1859_v0 }
 0x2d9   : > { %1776 = vmatpush3.msra.mxu0 %v1134_v31 }
 0x2da   : > { %1777 = vmatprep.subr.mxu0 %v1859_v0 }
 0x2db   : > { %1778 = vmatpush3.msra.mxu0 %v1133_v32 }
 0x2dc   : > { %1779 = vmatprep.subr.mxu0 %v1859_v0 }
 0x2dd   : > { %1780 = vmatpush3.msra.mxu0 %v1132_v34 }
 0x2de   : > { %1781 = vmatprep.subr.mxu0 %v1859_v0 }
 0x2df   : > { %1782 = vmatpush3.msra.mxu0 %v1131_v35 }
 0x2e0   : > { %1783 = vmatprep.subr.mxu0 %v1859_v0 }
 0x2e1   : > { %1784 = vmatpush3.msra.mxu0 %v1130_v36 }
 0x383   : > { %v1017_v13 = vpop.f32.mrf.mxu1 }
 0x385   : > { %v1763_v14 = vpop.f32.mrf.mxu1 }
 0x387   : > { %v1090_v16 = vpop.f32.mrf.mxu1 }
 0x388   : > { %v1095_v17 = vrot.slane %v1090_v16, 7 }
 0x389   : > { %v1768_v18 = vpop.f32.mrf.mxu1 }
 0x38a   : > { %v1098_v19 = vsel %vm1097_vm7, %v1017_v13, %v1095_v17 }
 0x38b   : > { %v1100_v15 = vsel %vm1099_vm8, %v1098_v19, 0.0 }
 0x38c   : > { %1101 = vadd.xlane.f32.xlu0 %v1100_v15 }
 0x38f   : > { %v1295_v39 = vpop.f32.mrf.mxu1 }
 0x390   : > { %v1296_v40 = vadd.f32 %v1678_v38, %v1295_v39 }
 0x391   : > { %v1798_v41 = vpop.f32.mrf.mxu1 }
 0x415   : > { %v1102_v27 = vpop.xlane.xlu0 %1101 }
 0x416   : > { %v1104_v28 = vmul.f32 0.015625, %v1102_v27 }
 0x418   : > { %v1105_v29 = vsub.f32 %v1098_v19, %v1104_v28 }
 0x41a   : > { %v1106_v30 = vmul.f32 %v1105_v29, %v1105_v29 }
 0x41c   : > { %v1107_v4 = vsel %vm1099_vm8, %v1106_v30, 0.0 }
 0x41d   : > { %1108 = vadd.xlane.f32.xlu0 %v1107_v4 }
 0x433   : > { %1307 = vrot.lane.b32.xlu0 %v1296_v40, %s1863_s26 }
 0x4a6   : > { %v1109_v43 = vpop.xlane.xlu0 %1108 }
 0x4a7   : > { %v1110_v44 = vmul.f32 0.015625, %v1109_v43 }
 0x4a9   : > { %v1111_v45 = vadd.f32 1e-05, %v1110_v44 }
 0x4aa   : > { %v1308_v62 = vpop.permute.xlu0 %1307 }
 0x4ab   : > { %1835 = vrsqrt.f32 %v1111_v45 }
 0x4b8   : > { %v1836_v0 = vpop.eup %1835 }
 0x4b9   : > { %v1113_v48 = vmul.f32 %v1836_v0, %v1105_v29 }
 0x4bb   : > { %v1121_v50 = vmul.f32 %v1674_v47, %v1113_v48 }
 0x4bd   : > { %v1129_v52 = vadd.f32 %v1675_v49, %v1121_v50 }
 0x4bf   : > { %1786 = vmatmul.mubr.msk.f32.vlgmr.msra.gmra.mxu0 %vm686_vm1, %v1129_v52 }
 0x57f   : > { %v1214_v54 = vpop.f32.mrf.mxu0 }
 0x580   : > { %v1215_v56 = vadd.f32 %v1676_v53, %v1214_v54 }
 0x581   : > { %v1787_v57 = vpop.f32.mrf.mxu0 }
 0x582   : > { %v1299_v58 = vadd.f32 %v1296_v40, %v1215_v56 }
 0x584   : > { %v1680_v59 = vmul.f32 -1.442695, %v1299_v58 }
 0x586   : > { %1837 = vpow2.f32 %v1680_v59 }
 0x593   : > { %v1838_v60 = vpop.eup %1837 }
 0x594   : > { %v1303_v61 = vadd.f32 1.0, %v1838_v60 }
 0x596   : > { %1839 = vrcp.f32 %v1303_v61 }
 0x5a3   : > { %v1840_v63 = vpop.eup %1839 }
 0x5a4   : > { %v1310_v1 = vmul.f32 %v1840_v63, %v1308_v62  ;;  %v1317_v10 = vsub.f32 1.0, %v1840_v63 }
 0x5a6   : > { %1312 = vrot.lane.b32.xlu1 %v1310_v1, %s1863_s26 }
 0x618   : > { %v1313_v2 = vpop.permute.xlu1 %1312 }
 0x619   : > { %v1315_v3 = vadd.f32 %v1313_v2, %v1215_v56 }
 0x61b   : > { %1841 = vtanh.f32 %v1315_v3 }
 0x628   : > { %v1842_v6 = vpop.eup %1841 }
 0x629   : > { %1319 = vrot.lane.b32.xlu0 %v1842_v6, %s1864_s24 }
 0x62d   : > { %1323 = vrot.lane.b32.xlu0 %v1998_v11, %s1865_s19 }
 0x69b   : > { %v1320_v8 = vpop.permute.xlu0 %1319 }
 0x69c   : > { %v1322_v13 = vmul.f32 %v1320_v8, %v1317_v10 }
 0x69f   : > { %v1324_v12 = vpop.permute.xlu0 %1323 }
 0x6a0   : > { %v1326_v14 = vmul.f32 %v1840_v63, %v1324_v12 }
 0x6a2   : > { %v1327_v16 = vadd.f32 %v1326_v14, %v1322_v13 }
 0x6a4   : > { %1340 = vrot.lane.b32.xlu0 %v1327_v16, %s1864_s24 }
 0x716   : > { %v1341_v17 = vpop.permute.xlu0 %1340 }
 0x717   : > { %1808 = vmatmul.mubr.msk.f32.vlgmr.msra.gmra.mxu1 %vm781_vm2, %v1341_v17 }
 0x7d7   : > { %v1410_v18 = vpop.f32.mrf.mxu1 }
 0x7d8   : > { %v1411_v19 = vadd.f32 %v2031_v25, %v1410_v18 }
 0x7d9   : > { %v1809_v15 = vpop.f32.mrf.mxu1 }
 0x7da   : > { %v1421_v20 = vrot.slane %v1411_v19, %v2033_v26 }
 0x7dc   : > { %v1422_v22 = vcombine.high %v1421_v20, %v1421_v20  ;;  %v1429_v23 = vrot.slane %v1421_v20, %v2033_v26 }
 0x7de   : > { %v1436_v11 = vrot.slane %v1422_v22, %v2033_v26  ;;  %v1440_v24 = vrot.slane %v1429_v23, %v2042_v33 }
 0x7e0   : > { %v1444_v27 = vrot.slane %v1436_v11, %v2042_v33  ;;  %v1447_v28 = vadd.f32 %v1440_v24, %v2050_v42 }
 0x7e2   : > { %v1448_v29 = vadd.f32 %v1444_v27, %v2045_v37  ;;  %1843 = vtanh.f32 %v1447_v28 }
 0x7e4   : > { %1845 = vtanh.f32 %v1448_v29 }
 0x7ef   : > { %v1844_v30 = vpop.eup %1843 }
 0x7f0   : > { %v1451_v25 = vmul.f32 %v1844_v30, %v2057_v46 }
 0x7f1   : > { %v1846_v4 = vpop.eup %1845 }
 0x7f2   : > { %v1453_v5 = vsel %vm781_vm2, %v1451_v25, 0.0  ;;  %v1452_v7 = vmul.f32 %v1846_v4, %v2057_v46 }
 0x7f3   : > { %1454 = vadd.xlane.f32.xlu0 %v1453_v5 }
 0x7f4   : > { %v1456_v26 = vsel %vm781_vm2, %v1452_v7, 0.0 }
 0x7f5   : > { %1457 = vadd.xlane.f32.xlu1 %v1456_v26 }
 0x87c   : > { %v1455_v9 = vpop.xlane.xlu0 %1454 }
 0x87d   : > { %v1459_v33 = vadd.f32 %v1455_v9, %v2063_v51 }
 0x87e   : > { %v1458_v42 = vpop.xlane.xlu1 %1457 }
 0x87f   : > { %v1460_v37 = vadd.f32 %v1458_v42, %v2063_v51  ;;  %v1466_v31 = vrot.slane %v1459_v33, %v2025_v21 }
 0x881   : > { %v1470_v32 = vrot.slane %v1460_v37, %v2025_v21 }
 0x883   : > { %v1471_v34 = vsel %vm930_vm3, %v1470_v32, %v1466_v31 }
 0x884   : > { %v1473_v46 = vsel %vm917_vm4, -1e+30, %v1471_v34 }
 0x885   : > { %v1474_v35 = vsel %vm934_vm5, %v1473_v46, -inf }
 0x886   : > { %1475 = vmax.xlane.f32.xlu0 %v1474_v35 }
 0x90f   : > { %v1476_v36 = vpop.xlane.xlu0 %1475 }
 0x910   : > { %v1477_v38 = vsub.f32 %v1473_v46, %v1476_v36 }
 0x912   : > { %v1478_v39 = vmul.f32 1.442695, %v1477_v38 }
 0x914   : > { %1847 = vpow2.f32 %v1478_v39 }
 0x921   : > { %v1848_v40 = vpop.eup %1847 }
 0x922   : > { %v1480_v51 = vsel %vm934_vm5, %v1848_v40, 0.0 }
 0x923   : > { %1481 = vadd.xlane.f32.xlu0 %v1480_v51 }
 0x9ac   : > { %v1482_v41 = vpop.xlane.xlu0 %1481 }
 0x9ad   : > { %1849 = vrcp.f32 %v1482_v41 }
 0x9ba   : > { %v1850_v21 = vpop.eup %1849 }
 0x9bb   : > { %v1484_v43 = vmul.f32 %v1850_v21, %v1848_v40 }
 0x9bd   : > { %1683 = vst.msk [vmem:[%s2084_s29 + $0x2] sm:$0x3] %vm934_vm5, %v1484_v43 }
 0x9be PF: > { %s25_s18 = sadd.s32 1, %s1857_s18  }
 0x9bf   : > { %p22_p4 = scmp.ge.s32.totalorder %s25_s18, 4  }
 0x9c1   :  { %24 = sbr.rel (!%p22_p4) target bundleno = 1 (0x1), region = 144 }

</bundles_post_ra>
